<compile_context>
chip_gen: v6e
topology: v6e:2x2x1
jax: 0.10.0
libtpu: 0.0.40
codegen_flags: <defaults>
</compile_context>

<pallas_src>
import functools

import jax
import jax.numpy as jnp
from jax.experimental import pallas as pl
from jax.experimental.pallas import tpu as pltpu

NEG_SLOPE = 0.01  # nnUNet default LeakyReLU slope (only used by the reference)


def _unroll_max_kernel(C, c_ref, nb_ref, hp_ref, hn_ref, w_ref, b_ref, o_ref):
    # c_ref / nb_ref / o_ref : (1, TD, H, W*C)   lane-fused D-slab
    # hp_ref / hn_ref        : (1, 1, H, W*C)    circularly adjacent D planes
    # w_ref : (W*C, W*C) block-diagonal kron(I_W, w)      b_ref : (1, W*C)
    _, TD, H, WC = nb_ref.shape
    R = TD * H
    wb = w_ref[...]

    # Centre projection with bias folded in once (hoisted out of the 6-way max).
    cw = jnp.dot(c_ref[0].reshape(R, WC), wb,
                 preferred_element_type=jnp.float32) + b_ref[...]

    # Neighbour: project the whole slab once, plus the two D-halo planes.
    nw = jnp.dot(nb_ref[0].reshape(R, WC), wb, preferred_element_type=jnp.float32)
    pw = jnp.dot(hp_ref[0, 0], wb, preferred_element_type=jnp.float32)   # plane d0-1
    xw = jnp.dot(hn_ref[0, 0], wb, preferred_element_type=jnp.float32)   # plane d0+TD

    # W +- 1  -> lane rotation by +-C on the fused (W*C) axis (XLU slot, 2-D proven).
    if WC > C:
        w_lo = pltpu.roll(nw, C % WC, axis=1)
        w_hi = pltpu.roll(nw, (WC - C) % WC, axis=1)
        m = jnp.maximum(w_lo, w_hi).reshape(TD, H, WC)
    else:
        m = nw.reshape(TD, H, WC)            # W == 1: roll is identity

    nw3 = nw.reshape(TD, H, WC)

    # H +- 1  -> circular shift along the sublane axis within each plane.
    if H > 1:
        h_lo = jnp.concatenate([nw3[:, -1:], nw3[:, :-1]], axis=1)
        h_hi = jnp.concatenate([nw3[:, 1:], nw3[:, :1]], axis=1)
        m = jnp.maximum(m, jnp.maximum(h_lo, h_hi))
    else:
        m = jnp.maximum(m, nw3)

    # D +- 1  -> adjacent planes; the halos supply the block boundaries and the
    # circular wrap is handled by the modular index_maps in the BlockSpecs.
    if TD > 1:
        d_lo = jnp.concatenate([pw[None], nw3[:-1]], axis=0)
        d_hi = jnp.concatenate([nw3[1:], xw[None]], axis=0)
    else:
        d_lo = pw[None]
        d_hi = xw[None]
    m = jnp.maximum(m, jnp.maximum(d_lo, d_hi))

    # zeros-init + max over LeakyReLU(z_i)  ==  relu(max_i z_i)   (exact: slope > 0)
    o_ref[0] = jnp.maximum(cw.reshape(TD, H, WC) + m, 0.0).astype(o_ref.dtype)


def _choose_td(D, H, WC, target_rows=512, max_block_bytes=2 * 1024 * 1024):
    """Largest divisor of D whose (TD*H, W*C) slab stays within the row / byte targets."""
    best = 1
    for td in range(1, D + 1):
        if D % td != 0:
            continue
        rows_ok = td * H <= target_rows
        bytes_ok = td * H * WC * 4 <= max_block_bytes
        if (rows_ok or td == 1) and bytes_ok:
            best = td
    return best


def unroll_max_fused(c_f, n_f, w, b):
    """Fast path.  c_f, n_f: (N, D, H, W*C) channels-last lane-fused.  w: (C,C), b: (C,).
    Returns (N, D, H, W*C)."""
    N, D, H, WC = c_f.shape
    C = w.shape[0]
    assert WC % C == 0, "last axis must be W*C"
    W = WC // C

    # Block-diagonal weight so the pointwise conv contracts the fused lane axis.
    # TODO(synk): replace by a plain C-contraction when W*C grows past ~512 lanes.
    w_big = jnp.kron(jnp.eye(W, dtype=w.dtype), w)       # (W*C, W*C)
    b_big = jnp.tile(b, W).reshape(1, WC)                  # (1, W*C)

    TD = _choose_td(D, H, WC)
    ND = D // TD

    slab = pl.BlockSpec((1, TD, H, WC), lambda n, db: (n, db, 0, 0))
    halo_prev = pl.BlockSpec((1, 1, H, WC),
                             lambda n, db: (n, (db * TD + D - 1) % D, 0, 0))
    halo_next = pl.BlockSpec((1, 1, H, WC),
                             lambda n, db: (n, (db * TD + TD) % D, 0, 0))
    w_spec = pl.BlockSpec((WC, WC), lambda n, db: (0, 0))   # resident across the grid
    b_spec = pl.BlockSpec((1, WC), lambda n, db: (0, 0))

    # Right-sized scoped VMEM: double-buffered slabs + halos + resident weights + margin.
    blk_bytes = TD * H * WC * 4
    halo_bytes = H * WC * 4
    w_bytes = (WC * WC + WC) * 4
    footprint = 2 * (3 * blk_bytes + 2 * halo_bytes) + 2 * w_bytes
    vmem_limit = int(min(max(4 * footprint, 4 * 1024 * 1024), 32 * 1024 * 1024))

    return pl.pallas_call(
        functools.partial(_unroll_max_kernel, C),
        out_shape=jax.ShapeDtypeStruct((N, D, H, WC), c_f.dtype),
        grid=(N, ND),
        in_specs=[slab, slab, halo_prev, halo_next, w_spec, b_spec],
        out_specs=slab,
        compiler_params=pltpu.CompilerParams(
            dimension_semantics=("parallel", "parallel"),
            vmem_limit_bytes=vmem_limit,
        ),
    )(c_f, n_f, n_f, n_f, w_big, b_big)


def unroll_max(centre, neighbour, w, b):
    """NCDHW adapter matching the PyTorch interface.
    centre, neighbour: (N, C, D, H, W) float32.  w: (C, C), b: (C,).
    TODO(synk): keep the model channels-last end-to-end to avoid these three
                full-volume HBM transpose passes around the kernel."""
    N, C, D, H, W = centre.shape
    WC = W * C
    c_f = jnp.transpose(centre, (0, 2, 3, 4, 1)).reshape(N, D, H, WC)
    n_f = jnp.transpose(neighbour, (0, 2, 3, 4, 1)).reshape(N, D, H, WC)
    out_f = unroll_max_fused(c_f, n_f, w, b)
    return jnp.transpose(out_f.reshape(N, D, H, W, C), (0, 4, 1, 2, 3))


def unroll_max_reference(centre, neighbour, w, b):
    """Pure-JAX reference mirroring the PyTorch forward exactly (NCDHW)."""
    out = jnp.zeros_like(centre)
    for i in range(6):
        shift = int((i % 2 - 0.5) * 2)      # -1 for even i, +1 for odd i
        dim = i // 2 + 2                    # 2, 3, 4  (D, H, W)
        x = centre + jnp.roll(neighbour, shift, axis=dim)
        y = jnp.einsum("ncdhw,ck->nkdhw", x, w) + b[None, :, None, None, None]
        y = jnp.where(y > 0, y, NEG_SLOPE * y)   # LeakyReLU
        out = jnp.maximum(out, y)
    return out


if __name__ == "__main__":
    key = jax.random.PRNGKey(0)
    k1, k2, k3, k4 = jax.random.split(key, 4)

    N, C, D, H, W = 2, 16, 4, 8, 8          # W*C = 128 -> lane-dense fused axis
    centre = jax.random.normal(k1, (N, C, D, H, W), dtype=jnp.float32)
    neighbour = jax.random.normal(k2, (N, C, D, H, W), dtype=jnp.float32)
    w = jax.random.normal(k3, (C, C), dtype=jnp.float32) * 0.1
    b = jax.random.normal(k4, (C,), dtype=jnp.float32) * 0.1

    out = jax.block_until_ready(unroll_max(centre, neighbour, w, b))
    ref = jax.block_until_ready(unroll_max_reference(centre, neighbour, w, b))

    assert out.shape == (N, C, D, H, W)
    assert jnp.allclose(out, ref, rtol=1e-5, atol=1e-5), "mismatch vs reference"
    print("KERNEL_OK")
</pallas_src>

<mosaic_0001>
module attributes {stable_mosaic.version = 11 : i64} {
  func.func @_unroll_max_kernel(%arg0: i32, %arg1: i32, %arg2: memref<1x4x8x128xf32, #tpu.memory_space<vmem>>, %arg3: memref<1x4x8x128xf32, #tpu.memory_space<vmem>>, %arg4: memref<1x1x8x128xf32, #tpu.memory_space<vmem>>, %arg5: memref<1x1x8x128xf32, #tpu.memory_space<vmem>>, %arg6: memref<128x128xf32, #tpu.memory_space<vmem>>, %arg7: memref<1x128xf32, #tpu.memory_space<vmem>>, %arg8: memref<1x4x8x128xf32, #tpu.memory_space<vmem>>) attributes {dimension_semantics = [#tpu.dimension_semantics<parallel>, #tpu.dimension_semantics<parallel>], iteration_bounds = array<i64: 2, 1>, scalar_prefetch = 0 : i64, scratch_operands = 0 : i64, tpu.core_type = #tpu.core_type<tc>, window_params = [{transform_indices = @transform_0, window_bounds = array<i64: 1, 4, 8, 128>}, {transform_indices = @transform_1, window_bounds = array<i64: 1, 4, 8, 128>}, {transform_indices = @transform_2, window_bounds = array<i64: 1, 1, 8, 128>}, {transform_indices = @transform_3, window_bounds = array<i64: 1, 1, 8, 128>}, {pipeline_mode = #tpu.pipeline_mode<synchronous>, transform_indices = @transform_4, window_bounds = array<i64: 128, 128>}, {pipeline_mode = #tpu.pipeline_mode<synchronous>, transform_indices = @transform_5, window_bounds = array<i64: 1, 128>}, {transform_indices = @transform_6, window_bounds = array<i64: 1, 4, 8, 128>}]} {
    %c0 = arith.constant 0 : index
    %c0_0 = arith.constant 0 : index
    %0 = vector.load %arg6[%c0, %c0_0] : memref<128x128xf32, #tpu.memory_space<vmem>>, vector<128x128xf32>
    %c0_1 = arith.constant 0 : index
    %c0_2 = arith.constant 0 : index
    %c0_3 = arith.constant 0 : index
    %c0_4 = arith.constant 0 : index
    %1 = vector.load %arg2[%c0_1, %c0_2, %c0_3, %c0_4] : memref<1x4x8x128xf32, #tpu.memory_space<vmem>>, vector<1x4x8x128xf32>
    %2 = vector.shape_cast %1 : vector<1x4x8x128xf32> to vector<4x8x128xf32>
    %3 = vector.shape_cast %2 : vector<4x8x128xf32> to vector<32x128xf32>
    %cst = arith.constant dense<0.000000e+00> : vector<32x128xf32>
    %4 = tpu.matmul %3, %0, %cst {dimension_numbers = #tpu.dot_dimension_numbers<[1], [0], [0], [1], [0, 0, 1, 1], [], []>} : vector<32x128xf32>, vector<128x128xf32>, vector<32x128xf32> -> vector<32x128xf32>
    %c0_5 = arith.constant 0 : index
    %c0_6 = arith.constant 0 : index
    %5 = vector.load %arg7[%c0_5, %c0_6] : memref<1x128xf32, #tpu.memory_space<vmem>>, vector<1x128xf32>
    %6 = vector.broadcast %5 : vector<1x128xf32> to vector<32x128xf32>
    %7 = arith.addf %4, %6 : vector<32x128xf32>
    %c0_7 = arith.constant 0 : index
    %c0_8 = arith.constant 0 : index
    %c0_9 = arith.constant 0 : index
    %c0_10 = arith.constant 0 : index
    %8 = vector.load %arg3[%c0_7, %c0_8, %c0_9, %c0_10] : memref<1x4x8x128xf32, #tpu.memory_space<vmem>>, vector<1x4x8x128xf32>
    %9 = vector.shape_cast %8 : vector<1x4x8x128xf32> to vector<4x8x128xf32>
    %10 = vector.shape_cast %9 : vector<4x8x128xf32> to vector<32x128xf32>
    %cst_11 = arith.constant dense<0.000000e+00> : vector<32x128xf32>
    %11 = tpu.matmul %10, %0, %cst_11 {dimension_numbers = #tpu.dot_dimension_numbers<[1], [0], [0], [1], [0, 0, 1, 1], [], []>} : vector<32x128xf32>, vector<128x128xf32>, vector<32x128xf32> -> vector<32x128xf32>
    %c0_12 = arith.constant 0 : index
    %c0_13 = arith.constant 0 : index
    %c0_14 = arith.constant 0 : index
    %c0_15 = arith.constant 0 : index
    %12 = vector.load %arg4[%c0_12, %c0_13, %c0_14, %c0_15] : memref<1x1x8x128xf32, #tpu.memory_space<vmem>>, vector<1x1x8x128xf32>
    %13 = vector.shape_cast %12 : vector<1x1x8x128xf32> to vector<8x128xf32>
    %cst_16 = arith.constant dense<0.000000e+00> : vector<8x128xf32>
    %14 = tpu.matmul %13, %0, %cst_16 {dimension_numbers = #tpu.dot_dimension_numbers<[1], [0], [0], [1], [0, 0, 1, 1], [], []>} : vector<8x128xf32>, vector<128x128xf32>, vector<8x128xf32> -> vector<8x128xf32>
    %c0_17 = arith.constant 0 : index
    %c0_18 = arith.constant 0 : index
    %c0_19 = arith.constant 0 : index
    %c0_20 = arith.constant 0 : index
    %15 = vector.load %arg5[%c0_17, %c0_18, %c0_19, %c0_20] : memref<1x1x8x128xf32, #tpu.memory_space<vmem>>, vector<1x1x8x128xf32>
    %16 = vector.shape_cast %15 : vector<1x1x8x128xf32> to vector<8x128xf32>
    %cst_21 = arith.constant dense<0.000000e+00> : vector<8x128xf32>
    %17 = tpu.matmul %16, %0, %cst_21 {dimension_numbers = #tpu.dot_dimension_numbers<[1], [0], [0], [1], [0, 0, 1, 1], [], []>} : vector<8x128xf32>, vector<128x128xf32>, vector<8x128xf32> -> vector<8x128xf32>
    %c16_i32 = arith.constant 16 : i32
    %18 = tpu.dynamic_rotate %11 by %c16_i32 dim 1 : vector<32x128xf32>, i32 -> vector<32x128xf32>
    %c112_i32 = arith.constant 112 : i32
    %19 = tpu.dynamic_rotate %11 by %c112_i32 dim 1 : vector<32x128xf32>, i32 -> vector<32x128xf32>
    %20 = arith.maximumf %18, %19 : vector<32x128xf32>
    %21 = vector.shape_cast %20 : vector<32x128xf32> to vector<4x8x128xf32>
    %22 = vector.shape_cast %11 : vector<32x128xf32> to vector<4x8x128xf32>
    %23 = vector.extract_strided_slice %22 {offsets = [0, 7, 0], sizes = [4, 1, 128], strides = [1, 1, 1]} : vector<4x8x128xf32> to vector<4x1x128xf32>
    %24 = vector.extract_strided_slice %22 {offsets = [0, 0, 0], sizes = [4, 7, 128], strides = [1, 1, 1]} : vector<4x8x128xf32> to vector<4x7x128xf32>
    %25 = tpu.concatenate %23, %24 in 1 : vector<4x1x128xf32>, vector<4x7x128xf32> -> vector<4x8x128xf32>
    %26 = vector.extract_strided_slice %22 {offsets = [0, 1, 0], sizes = [4, 7, 128], strides = [1, 1, 1]} : vector<4x8x128xf32> to vector<4x7x128xf32>
    %27 = vector.extract_strided_slice %22 {offsets = [0, 0, 0], sizes = [4, 1, 128], strides = [1, 1, 1]} : vector<4x8x128xf32> to vector<4x1x128xf32>
    %28 = tpu.concatenate %26, %27 in 1 : vector<4x7x128xf32>, vector<4x1x128xf32> -> vector<4x8x128xf32>
    %29 = arith.maximumf %25, %28 : vector<4x8x128xf32>
    %30 = arith.maximumf %21, %29 : vector<4x8x128xf32>
    %31 = vector.shape_cast %14 : vector<8x128xf32> to vector<1x8x128xf32>
    %32 = vector.extract_strided_slice %22 {offsets = [0, 0, 0], sizes = [3, 8, 128], strides = [1, 1, 1]} : vector<4x8x128xf32> to vector<3x8x128xf32>
    %33 = tpu.concatenate %31, %32 in 0 : vector<1x8x128xf32>, vector<3x8x128xf32> -> vector<4x8x128xf32>
    %34 = vector.extract_strided_slice %22 {offsets = [1, 0, 0], sizes = [3, 8, 128], strides = [1, 1, 1]} : vector<4x8x128xf32> to vector<3x8x128xf32>
    %35 = vector.shape_cast %17 : vector<8x128xf32> to vector<1x8x128xf32>
    %36 = tpu.concatenate %34, %35 in 0 : vector<3x8x128xf32>, vector<1x8x128xf32> -> vector<4x8x128xf32>
    %37 = arith.maximumf %33, %36 : vector<4x8x128xf32>
    %38 = arith.maximumf %30, %37 : vector<4x8x128xf32>
    %39 = vector.shape_cast %7 : vector<32x128xf32> to vector<4x8x128xf32>
    %40 = arith.addf %39, %38 : vector<4x8x128xf32>
    %cst_22 = arith.constant 0.000000e+00 : f32
    %41 = vector.broadcast %cst_22 : f32 to vector<4x8x128xf32>
    %42 = arith.maximumf %40, %41 : vector<4x8x128xf32>
    %c0_23 = arith.constant 0 : index
    %c0_24 = arith.constant 0 : index
    %c0_25 = arith.constant 0 : index
    %c0_26 = arith.constant 0 : index
    %43 = vector.load %arg8[%c0_23, %c0_24, %c0_25, %c0_26] : memref<1x4x8x128xf32, #tpu.memory_space<vmem>>, vector<1x4x8x128xf32>
    %44 = vector.shape_cast %43 : vector<1x4x8x128xf32> to vector<4x8x128xf32>
    %45 = vector.shape_cast %42 : vector<4x8x128xf32> to vector<1x4x8x128xf32>
    tpu.vector_store %arg8[%c0_23, %c0_24, %c0_25, %c0_26], %45 {strides = array<i32>} : memref<1x4x8x128xf32, #tpu.memory_space<vmem>>, vector<1x4x8x128xf32>,
    return
  }
  func.func @transform_0(%arg0: i32, %arg1: i32) -> (i32, i32, i32, i32) {
    %c0_i32 = arith.constant 0 : i32
    %c0_i32_0 = arith.constant 0 : i32
    %c0_i32_1 = arith.constant 0 : i32
    return %arg0, %arg1, %c0_i32, %c0_i32_0 : i32, i32, i32, i32
  }
  func.func @transform_1(%arg0: i32, %arg1: i32) -> (i32, i32, i32, i32) {
    %c0_i32 = arith.constant 0 : i32
    %c0_i32_0 = arith.constant 0 : i32
    %c0_i32_1 = arith.constant 0 : i32
    return %arg0, %arg1, %c0_i32, %c0_i32_0 : i32, i32, i32, i32
  }
  func.func @transform_2(%arg0: i32, %arg1: i32) -> (i32, i32, i32, i32) {
    %c4_i32 = arith.constant 4 : i32
    %0 = arith.muli %arg1, %c4_i32 : i32
    %c4_i32_0 = arith.constant 4 : i32
    %1 = arith.addi %0, %c4_i32_0 : i32
    %c1_i32 = arith.constant 1 : i32
    %2 = arith.subi %1, %c1_i32 : i32
    %c4_i32_1 = arith.constant 4 : i32
    %c0_i32 = arith.constant 0 : i32
    %3 = arith.cmpi eq, %c4_i32_1, %c0_i32 : i32
    %c1_i32_2 = arith.constant 1 : i32
    %4 = arith.select %3, %c1_i32_2, %c4_i32_1 : i32
    %5 = arith.remsi %2, %4 : i32
    %c0_i32_3 = arith.constant 0 : i32
    %6 = arith.cmpi ne, %5, %c0_i32_3 : i32
    %c0_i32_4 = arith.constant 0 : i32
    %7 = arith.cmpi slt, %5, %c0_i32_4 : i32
    %c0_i32_5 = arith.constant 0 : i32
    %8 = arith.cmpi slt, %4, %c0_i32_5 : i32
    %9 = arith.xori %7, %8 : i1
    %10 = arith.andi %9, %6 : i1
    %11 = arith.addi %5, %4 : i32
    %12 = arith.select %10, %11, %5 : i32
    %c0_i32_6 = arith.constant 0 : i32
    %c0_i32_7 = arith.constant 0 : i32
    %c0_i32_8 = arith.constant 0 : i32
    return %arg0, %12, %c0_i32_6, %c0_i32_7 : i32, i32, i32, i32
  }
  func.func @transform_3(%arg0: i32, %arg1: i32) -> (i32, i32, i32, i32) {
    %c4_i32 = arith.constant 4 : i32
    %0 = arith.muli %arg1, %c4_i32 : i32
    %c4_i32_0 = arith.constant 4 : i32
    %1 = arith.addi %0, %c4_i32_0 : i32
    %c4_i32_1 = arith.constant 4 : i32
    %c0_i32 = arith.constant 0 : i32
    %2 = arith.cmpi eq, %c4_i32_1, %c0_i32 : i32
    %c1_i32 = arith.constant 1 : i32
    %3 = arith.select %2, %c1_i32, %c4_i32_1 : i32
    %4 = arith.remsi %1, %3 : i32
    %c0_i32_2 = arith.constant 0 : i32
    %5 = arith.cmpi ne, %4, %c0_i32_2 : i32
    %c0_i32_3 = arith.constant 0 : i32
    %6 = arith.cmpi slt, %4, %c0_i32_3 : i32
    %c0_i32_4 = arith.constant 0 : i32
    %7 = arith.cmpi slt, %3, %c0_i32_4 : i32
    %8 = arith.xori %6, %7 : i1
    %9 = arith.andi %8, %5 : i1
    %10 = arith.addi %4, %3 : i32
    %11 = arith.select %9, %10, %4 : i32
    %c0_i32_5 = arith.constant 0 : i32
    %c0_i32_6 = arith.constant 0 : i32
    %c0_i32_7 = arith.constant 0 : i32
    return %arg0, %11, %c0_i32_5, %c0_i32_6 : i32, i32, i32, i32
  }
  func.func @transform_4(%arg0: i32, %arg1: i32) -> (i32, i32) {
    %c0_i32 = arith.constant 0 : i32
    %c0_i32_0 = arith.constant 0 : i32
    %c0_i32_1 = arith.constant 0 : i32
    return %c0_i32, %c0_i32_0 : i32, i32
  }
  func.func @transform_5(%arg0: i32, %arg1: i32) -> (i32, i32) {
    %c0_i32 = arith.constant 0 : i32
    %c0_i32_0 = arith.constant 0 : i32
    %c0_i32_1 = arith.constant 0 : i32
    return %c0_i32, %c0_i32_0 : i32, i32
  }
  func.func @transform_6(%arg0: i32, %arg1: i32) -> (i32, i32, i32, i32) {
    %c0_i32 = arith.constant 0 : i32
    %c0_i32_0 = arith.constant 0 : i32
    %c0_i32_1 = arith.constant 0 : i32
    return %arg0, %arg1, %c0_i32, %c0_i32_0 : i32, i32, i32, i32
  }
}

</mosaic_0001>

<bundles_post_ra>
// kernel: tpu_custom_call.1
= control target key start
LH: loop header
LB: loop body
LE: loop exit
PB: predicated region body
PF: predicated region fallthrough
CT: control target
= control target key end

     0   :  { %s2242_s0 = inlined_call_operand.hbm [shape: f32[2,4,8,128], index: 0, kind: input, shape index: {}]   ;;  %s2243_s1 = inlined_call_operand.hbm [shape: f32[2,4,8,128], index: 1, kind: input, shape index: {}]   ;;  %s2244_s2 = inlined_call_operand.hbm [shape: f32[2,4,8,128], index: 2, kind: input, shape index: {}]   ;;  %s2245_s3 = inlined_call_operand.hbm [shape: f32[2,4,8,128], index: 3, kind: input, shape index: {}]   ;;  %s2246_s4 = inlined_call_operand.hbm [shape: f32[128,128], index: 4, kind: input, shape index: {}]   ;;  %s2247_s5 = inlined_call_operand.vmem [shape: f32[1,128], index: 5, kind: input, shape index: {}]   ;;  %s2248_s6 = inlined_call_operand.hbm [shape: f32[2,4,8,128], index: 6, kind: output, shape index: {}]  }
   0x1   :  { %2260 = sst [smem:[#allocation23_spill]] %s2242_s0 }
   0x2   :  { %2261 = sst [smem:[#allocation24_spill]] %s2243_s1 }
   0x3   :  { %2262 = sst [smem:[#allocation25_spill]] %s2246_s4 }
   0x4   :  { %11 = vsyncpa [#allocation3], 0 }
   0x5   :  { %13 = vsyncpa [#allocation3 + $0x1], 0 }
   0x6   :  { %14 = vsyncpa [#allocation6], 0 }
   0x7   :  { %16 = vsyncpa [#allocation6 + $0x1], 0 }
   0x8   :  { %17 = vsyncpa [#allocation9], 0 }
   0x9   :  { %19 = vsyncpa [#allocation9 + $0x1], 0 }
   0xa   :  { %20 = vsyncpa [#allocation4], 0 }
   0xb   :  { %22 = vsyncpa [#allocation4 + $0x1], 0  ;;  %s1780_s21 = smov 0   ;;  %s1782_s22 = smov 0  }
   0xc   :  { %s1784_s23 = smov 0   ;;  %s1786_s24 = smov 0  }
   0xd   :  { %s1788_s25 = smov 0   ;;  %s1790_s26 = smov 0  }
   0xe LB: > { %2263 = sst [smem:[#allocation17_spill]] %s1709_s21  ;;  %s1811_s27 = sadd.s32 4294967295, %s1729_s26   ;;  %s1729_s26 = sphi %s1790_s26, %s28_s26   ;;  %s1725_s25 = sphi %s1788_s25, %s2294_s25   ;;  %s1721_s24 = sphi %s1786_s24, %s2293_s24   ;;  %s1717_s23 = sphi %s1784_s23, %s2292_s23   ;;  %s1713_s22 = sphi %s1782_s22, %s2296_s22   ;;  %s1709_s21 = sphi %s1780_s21, %s2295_s21  }
   0xf   : > { %2264 = sst [smem:[#allocation18_spill]] %s1717_s23  ;;  %s1147_s28 = sadd.s32 4294967294, %s1729_s26  }
  0x10   : > { %2265 = sst [smem:[#allocation19_spill]] %s1725_s25  ;;  %p56_p0 = scmp.ne.s32.totalorder %s1717_s23, %s1713_s22 }
  0x11   : > { %p57_p1 = scmp.eq.s32.totalorder %s1729_s26, 0  ;;  %p62_p2 = scmp.ne.s32.totalorder %s1713_s22, %s1709_s21 }
  0x12   : > { %p2249_p3 = scmp.eq.s32.totalorder %s1811_s27, 0  ;;  %p270_p4 = scmp.eq.s32.totalorder %s1811_s27, 1 }
  0x13   : > { %p1822_p5 = por %p57_p1, %p56_p0  ;;  %p276_p6 = scmp.eq.s32.totalorder %s1147_s28, 1 }
  0x14   : > { %p1828_p7 = por %p2249_p3, %p62_p2  ;;  %p1832_p8 = por %p270_p4, %p56_p0 }
  0x15   : > { %p1836_p9 = por %p276_p6, %p62_p2  ;;  %p1148_p10 = scmp.ge.s32.totalorder %s1729_s26, 1 }
  0x16   : > { %p283_p11 = scmp.lt.s32.totalorder %s1729_s26, 3  ;;  %s1731_s11 = smov [#allocation10]  }
  0x17   : > { %s2269_s9 = scalar_select %p1836_p9, 1, 0 }
  0x18   : > { %p1842_p12 = pnand %p1148_p10, %p283_p11  ;;  %s295_s12 = sshll.u32 %s1731_s11, 4  ;;  %s296_s12 = int_to_ptr.vmem [resolvable:$true] %s295_s12 }
  0x19   : > { %2270 = sst [smem:[#allocation20_spill]] %s2269_s9  ;;  %s40_s14 = sadd.s32 1, %s1725_s25 }
  0x1a   : > { %p1417_p13 = pneg %p1842_p12  ;;  %s1858_s15 = sand.u32 1, %s1717_s23  }
  0x1b   : > { %p1860_p2 = scmp.ge.s32.totalorder %s40_s14, 2  ;;  %s1510_s17 = scalar_lea.vmem %s296_s12, 2048 }
  0x1c   : > { %p1852_p4 = pnand %p1417_p13, %p2249_p3  ;;  %p1511_p10 = scmp.ne.s32.totalorder %s296_s12, %s1510_s17 }
  0x1d   : > { %p1518_p1 = scmp.lt.s32.totalorder %s296_s12, %s296_s12  ;;  %p1519_p9 = scmp.lt.s32.totalorder %s1510_s17, %s1510_s17 }
  0x1e   : > { %p1501_p6 = pneg %p1852_p4 }
  0x1f   : > { %p1520_p13 = por %p1519_p9, %p1518_p1 }
  0x20   : > { %p1513_p11 = pnand %p1511_p10, %p1501_p6 }
  0x22   : > { %p1514_p0 = pneg %p1513_p11 }
  0x24   : > { %p1521_p3 = pnand %p1520_p13, %p1514_p0 }
  0x26   : > { %1524 = shalt.err (!%p1521_p3)
}
  0x27   : > { %s2250_s18 = smov 128   ;;  %s2252_s19 = smov 8  }
  0x28   : > { %s2274_s4 = sld [smem:[#allocation25_spill]]  ;;  %s2298_s14 = smov (%p1860_p2, %s40_s14), 0 }
  0x29   : > { %2275 = sst [smem:[#allocation21_spill]] %s2298_s14  ;;  %s1151_s11 = sshll.u32 %s1858_s15, 5 }
  0x2a   : > { %s1880_s17 = sshll.u32 %s1725_s25, 9  ;;  %s44_s29 = ssub.s32 %s1725_s25, %s2298_s14 }
  0x2b   : > { %p2276_p3 = scmp.lt.s32.totalorder %s1729_s26, 2  ;;  %p47_p0 = scmp.eq.s32.totalorder %s44_s29, 0 }
  0x2c   : > { %s2256_s20 = sand.u32 1, %s1729_s26   ;;  %s2280_s1 = sld [smem:[#allocation24_spill]] }
  0x2d   : > { %p1888_p9 = pnand %p2276_p3, %p1822_p5  ;;  %s1906_s30 = scalar_lea.sflag [#allocation6], %s2256_s20 }
  0x2e   : > { %1420 = dma.hbm_to_vmem [thread:$0]  (!%p1852_p4), %s2274_s4, 2048, %s296_s12, [#allocation9], %s2250_s18, %s2250_s18, %s2252_s19  }
  0x2f   : > { %s2278_s12 = sadd.s32 1, %s1717_s23  ;;  %s339_s4 = scalar_lea.vmem [#allocation5], %s1151_s11 }
  0x30   : > { %s1896_s16 = scalar_select %p47_p0, %s1717_s23, %s2278_s12  }
  0x31   : > { %s348_s14 = sshll.u32 %s339_s4, 4  ;;  %p1527_p5 = pneg %p1888_p9  ;;  %s349_s14 = int_to_ptr.vmem [resolvable:$true] %s348_s14 }
  0x32   : > { %2279 = sst [smem:[#allocation22_spill]] %s1896_s16  ;;  %s347_s19 = scalar_lea.hbm %s2280_s1, %s1880_s17 }
  0x33   : > { %s1538_s25 = scalar_lea.vmem %s349_s14, 512  ;;  %s1734_s29 = smov [#allocation5]  }
  0x34   : > { %p1539_p1 = scmp.ne.s32.totalorder %s349_s14, %s1538_s25  ;;  %s1543_s12 = sshll.u32 %s1734_s29, 4  ;;  %s1544_s12 = int_to_ptr.vmem [resolvable:$false] %s1543_s12 }
  0x35   : > { %s1545_s18 = scalar_lea.vmem %s1544_s12, 1024  ;;  %p1546_p6 = scmp.lt.s32.totalorder %s349_s14, %s1544_s12 }
  0x36   : > { %p1541_p4 = pnand %p1539_p1, %p1527_p5  ;;  %p1547_p10 = scmp.lt.s32.totalorder %s1545_s18, %s1538_s25 }
  0x38   : > { %p1542_p2 = pneg %p1541_p4  ;;  %p1548_p11 = por %p1547_p10, %p1546_p6 }
  0x3a   : > { %p1549_p13 = pnand %p1548_p11, %p1542_p2 }
  0x3c   : > { %1552 = shalt.err (!%p1549_p13)
}
  0x3d   : > { %s2281_s4 = smov 8   ;;  %s2282_s28 = smov 128  }
  0x3e   : > { %1427 = dma.hbm_to_vmem [thread:$0]  (!%p1888_p9), %s347_s19, 512, %s349_s14, %s1906_s30, %s2282_s28, %s2282_s28, %s2281_s4  }
  0x3f   : > { %s2283_s0 = sld [smem:[#allocation23_spill]]  ;;  %s316_s25 = scalar_lea.vmem [#allocation2], %s1151_s11 }
  0x40   : > { %s325_s18 = sshll.u32 %s316_s25, 4  ;;  %s1157_s1 = sshll.u32 %s1858_s15, 3  ;;  %s326_s18 = int_to_ptr.vmem [resolvable:$true] %s325_s18 }
  0x41   : > { %s313_s16 = scalar_lea.sflag [#allocation3], %s1858_s15  ;;  %s1566_s23 = scalar_lea.vmem %s326_s18, 512 }
  0x42   : > { %p1567_p3 = scmp.ne.s32.totalorder %s326_s18, %s1566_s23  ;;  %s1735_s9 = smov [#allocation2]  }
  0x43   : > { %s1571_s21 = sshll.u32 %s1735_s9, 4  ;;  %s1572_s21 = int_to_ptr.vmem [resolvable:$false] %s1571_s21 }
  0x44   : > { %p1569_p0 = pnand %p1567_p3, %p1527_p5  ;;  %s1573_s14 = scalar_lea.vmem %s1572_s21, 1024 }
  0x45   : > { %s324_s12 = scalar_lea.hbm %s2283_s0, %s1880_s17  ;;  %p1574_p4 = scmp.lt.s32.totalorder %s326_s18, %s1572_s21 }
  0x46   : > { %p1570_p1 = pneg %p1569_p0  ;;  %p1575_p2 = scmp.lt.s32.totalorder %s1573_s14, %s1566_s23 }
  0x48   : > { %p1576_p6 = por %p1575_p2, %p1574_p4 }
  0x4a   : > { %p1577_p10 = pnand %p1576_p6, %p1570_p1 }
  0x4c   : > { %1580 = shalt.err (!%p1577_p10)
}
  0x4d   : > { %1424 = dma.hbm_to_vmem [thread:$0]  (!%p1888_p9), %s324_s12, 512, %s326_s18, %s313_s16, %s2282_s28, %s2282_s28, %s2281_s4  }
  0x4e   : > { %s1179_s19 = sadd.s32 384, %s1880_s17  ;;  %s362_s21 = scalar_lea.vmem [#allocation7], %s1157_s1 }
  0x4f   : > { %s383_s9 = scalar_lea.hbm %s2244_s2, %s1179_s19  ;;  %s385_s23 = sshll.u32 %s362_s21, 4  ;;  %s386_s23 = int_to_ptr.vmem [resolvable:$true] %s385_s23 }
  0x50   : > { %s1594_s29 = scalar_lea.vmem %s386_s23, 128  ;;  %s1736_s25 = smov [#allocation7]  }
  0x51   : > { %p1595_p11 = scmp.ne.s32.totalorder %s386_s23, %s1594_s29  ;;  %s1599_s14 = sshll.u32 %s1736_s25, 4  ;;  %s1600_s14 = int_to_ptr.vmem [resolvable:$false] %s1599_s14 }
  0x52   : > { %s1601_s0 = scalar_lea.vmem %s1600_s14, 256  ;;  %p1602_p0 = scmp.lt.s32.totalorder %s386_s23, %s1600_s14 }
  0x53   : > { %p1597_p13 = pnand %p1595_p11, %p1527_p5  ;;  %p1603_p1 = scmp.lt.s32.totalorder %s1601_s0, %s1594_s29 }
  0x55   : > { %p1598_p3 = pneg %p1597_p13  ;;  %p1604_p4 = por %p1603_p1, %p1602_p0 }
  0x57   : > { %p1605_p2 = pnand %p1604_p4, %p1598_p3 }
  0x59   : > { %1608 = shalt.err (!%p1605_p2)
}
  0x5a   : > { %1430 = dma.hbm_to_vmem [thread:$0]  (!%p1888_p9), %s383_s9, 128, %s386_s23, %s1906_s30  }
  0x5b   : > { %s417_s28 = scalar_lea.hbm %s2245_s3, %s1880_s17  ;;  %s396_s12 = scalar_lea.vmem [#allocation8], %s1157_s1 }
  0x5c   : > { %s419_s18 = sshll.u32 %s396_s12, 4  ;;  %s2284_s0 = sand.u32 1, %s1729_s26   ;;  %s420_s18 = int_to_ptr.vmem [resolvable:$true] %s419_s18 }
  0x5d   : > { %s393_s19 = scalar_lea.sflag [#allocation9], %s2284_s0  ;;  %s1622_s11 = scalar_lea.vmem %s420_s18, 128 }
  0x5e   : > { %p1623_p6 = scmp.ne.s32.totalorder %s420_s18, %s1622_s11  ;;  %s1737_s20 = smov [#allocation8]  }
  0x5f   : > { %s1627_s21 = sshll.u32 %s1737_s20, 4  ;;  %s1628_s21 = int_to_ptr.vmem [resolvable:$false] %s1627_s21 }
  0x60   : > { %p1625_p10 = pnand %p1623_p6, %p1527_p5  ;;  %s1629_s30 = scalar_lea.vmem %s1628_s21, 256 }
  0x61   : > { %p1630_p13 = scmp.lt.s32.totalorder %s420_s18, %s1628_s21  ;;  %p1631_p3 = scmp.lt.s32.totalorder %s1629_s30, %s1622_s11 }
  0x62   : > { %p1626_p11 = pneg %p1625_p10 }
  0x63   : > { %p1632_p0 = por %p1631_p3, %p1630_p13 }
  0x65   : > { %p1633_p1 = pnand %p1632_p0, %p1626_p11 }
  0x67   : > { %1636 = shalt.err (!%p1633_p1)
}
  0x68   : > { %1433 = dma.hbm_to_vmem [thread:$0]  (!%p1888_p9), %s417_s28, 128, %s420_s18, %s393_s19  }
  0x69   : > { %428 = sbr.rel (%p1842_p12) target bundleno = 500 (0x1f4), region = 44  ;;  %s1963_s1 = sand.u32 (!%p1842_p12), 1, %s1713_s22  }
  0x6a   : > { %s1966_s15 = sshll.u32 (!%p1842_p12), %s1963_s1, 5  ;;  %s431_s17 = scalar_lea.sflag (!%p1842_p12), [#allocation3], %s1963_s1 }
  0x6b   : > { %s1970_s9 = scalar_lea.vmem (!%p1842_p12), [#allocation2], %s1966_s15 }
  0x6e   : > { %1688 = dma.done.wait (%p1828_p7), %s431_s17, 512  }
  0x6f   : > { %1690 = vsyncadd (%p1828_p7), %s431_s17, 4294966784  ;;  %s439_s10 = sand.u32 1, %s1811_s27   ;;  %s1978_s23 = scalar_lea.vmem [#allocation5], %s1966_s15 }
  0x70   : > { %s440_s13 = scalar_lea.sflag [#allocation6], %s439_s10 }
  0x71   : > { %1692 = dma.done.wait (%p1828_p7), %s440_s13, 640  }
  0x72   : > { %1694 = vsyncadd (%p1828_p7), %s440_s13, 4294966656  ;;  %s1166_s29 = sshll.u32 %s1963_s1, 3  ;;  %s458_s14 = scalar_lea.sflag [#allocation9], %s439_s10 }
  0x73   : > { %s1985_s25 = scalar_lea.vmem [#allocation7], %s1166_s29  ;;  %s1987_s16 = scalar_lea.vmem [#allocation8], %s1166_s29 }
  0x74   : > { %1696 = dma.done.wait (%p1828_p7), %s458_s14, 128  }
  0x75   : > { %1698 = vsyncadd (%p1828_p7), %s458_s14, 4294967168  ;;  %p2285_p12 = scmp.eq.s32.totalorder %s1811_s27, 0 }
  0x77   : > { %1700 = dma.done.wait (%p2285_p12), [#allocation9], 2048   ;;  %p2286_p9 = pmov %p2285_p12 }
  0x78   : > { %v1997_v0 = vld [vmem:[#allocation10 + $0x78] sm:$0xff]  ;;  %v1999_v1 = vld [vmem:[#allocation10 + $0x70] sm:$0xff]  ;;  %v2005_v2 = vld [vmem:[#allocation10 + $0x68] sm:$0xff]  ;;  %v1738_v20 = vmov 0.0   ;;  %vm1739_vm0 = vmmov 0   ;;  %s1740_s27 = smov 112  }
  0x79   : > { %1702 = vsyncadd (%p2286_p9), [#allocation9], 4294965248  ;;  %1257 = vmatprep.subr.mxu0 %v1997_v0  ;;  %1295 = vmatprep.subr.mxu1 %v1997_v0  ;;  %v2011_v3 = vld [vmem:[#allocation10 + $0x60] sm:$0xff]  ;;  %v2017_v4 = vld [vmem:[#allocation10 + $0x58] sm:$0xff]  ;;  %s1741_s7 = smov 16   ;;  %s2181_s12 = scalar_lea.vmem [#allocation11], %s1966_s15 }
  0x7a   : > { %1258 = vmatpush3.msra.mxu0 %v1997_v0  ;;  %1296 = vmatpush3.msra.mxu1 %v1997_v0  ;;  %v2023_v5 = vld [vmem:[#allocation10 + $0x50] sm:$0xff]  ;;  %v2029_v6 = vld [vmem:[#allocation10 + $0x48] sm:$0xff]  ;;  %v2035_v7 = vld [vmem:[#allocation10 + $0x40] sm:$0xff]  ;;  %s977_s18 = sshll.u32 %s2181_s12, 4  ;;  %s1181_s0 = sshll.u32 %s1721_s24, 9  ;;  %s2187_s18 = int_to_ptr.vmem [resolvable:$true] %s977_s18 }
  0x7b   : > { %1259 = vmatprep.subr.mxu0 %v1999_v1  ;;  %1297 = vmatprep.subr.mxu1 %v1999_v1  ;;  %v2041_v8 = vld [vmem:[#allocation10 + $0x38] sm:$0xff]  ;;  %v2047_v9 = vld [vmem:[#allocation10 + $0x30] sm:$0xff]  ;;  %v2053_v10 = vld [vmem:[#allocation10 + $0x28] sm:$0xff]  ;;  %s2192_s20 = scalar_lea.hbm %s2248_s6, %s1181_s0  ;;  %s962_s21 = scalar_lea.sflag [#allocation4], %s1963_s1 }
  0x7c   : > { %1260 = vmatpush3.msra.mxu0 %v1999_v1  ;;  %1298 = vmatpush3.msra.mxu1 %v1999_v1  ;;  %v2059_v11 = vld [vmem:[#allocation10 + $0x20] sm:$0xff]  ;;  %v2065_v12 = vld [vmem:[#allocation10 + $0x18] sm:$0xff]  ;;  %v2071_v13 = vld [vmem:[#allocation10 + $0x10] sm:$0xff]  ;;  %s1637_s30 = scalar_lea.vmem %s2187_s18, 512  ;;  %s1742_s24 = smov [#allocation11]  }
  0x7d   : > { %1261 = vmatprep.subr.mxu0 %v2005_v2  ;;  %1299 = vmatprep.subr.mxu1 %v2005_v2  ;;  %v2077_v14 = vld [vmem:[#allocation10 + $0x8] sm:$0xff]  ;;  %v2083_v15 = vld [vmem:[#allocation10] sm:$0xff]  ;;  %v654_v21 = vld [vmem:[%s1978_s23 + $0x10] sm:$0xff]  ;;  %p1638_p7 = scmp.ne.s32.totalorder %s2187_s18, %s1637_s30  ;;  %s1641_s15 = sshll.u32 %s1742_s24, 4  ;;  %s1642_s15 = int_to_ptr.vmem [resolvable:$false] %s1641_s15 }
  0x7e   : > { %1262 = vmatpush3.msra.mxu0 %v2005_v2  ;;  %1300 = vmatpush3.msra.mxu1 %v2005_v2  ;;  %v652_v16 = vld [vmem:[%s1978_s23] sm:$0xff]  ;;  %v653_v18 = vld [vmem:[%s1978_s23 + $0x8] sm:$0xff]  ;;  %v655_v22 = vld [vmem:[%s1978_s23 + $0x18] sm:$0xff]  ;;  %s1643_s17 = scalar_lea.vmem %s1642_s15, 1024  ;;  %p1644_p2 = scmp.lt.s32.totalorder %s2187_s18, %s1642_s15 }
  0x7f   : > { %1263 = vmatprep.subr.mxu0 %v2011_v3  ;;  %1301 = vmatprep.subr.mxu1 %v2011_v3  ;;  %v556_v17 = vld [vmem:[%s1970_s9] sm:$0xff]  ;;  %v557_v19 = vld [vmem:[%s1970_s9 + $0x8] sm:$0xff]  ;;  %v558_v23 = vld [vmem:[%s1970_s9 + $0x10] sm:$0xff]  ;;  %p1639_p5 = pnand %p1638_p7, %p1832_p8  ;;  %p1645_p6 = scmp.lt.s32.totalorder %s1643_s17, %s1637_s30 }
  0x80   : > { %1264 = vmatpush3.msra.mxu0 %v2011_v3  ;;  %1302 = vmatpush3.msra.mxu1 %v2011_v3  ;;  %v559_v24 = vld [vmem:[%s1970_s9 + $0x18] sm:$0xff]  ;;  %v741_v25 = vld [vmem:[%s1985_s25] sm:$0xff] }
  0x81   : > { %1265 = vmatprep.subr.mxu0 %v2017_v4  ;;  %1303 = vmatprep.subr.mxu1 %v2017_v4  ;;  %v812_v26 = vld [vmem:[%s1987_s16] sm:$0xff]  ;;  %v1170_v49 = vld [vmem:[%s2247_s5] ss:$0 sm:$0xff]  ;;  %p1640_p4 = pneg %p1639_p5  ;;  %p1646_p10 = por %p1645_p6, %p1644_p2 }
  0x82   : > { %1266 = vmatpush3.msra.mxu0 %v2017_v4  ;;  %1304 = vmatpush3.msra.mxu1 %v2017_v4 }
  0x83   : > { %1267 = vmatprep.subr.mxu0 %v2023_v5  ;;  %1305 = vmatprep.subr.mxu1 %v2023_v5  ;;  %p1647_p11 = pnand %p1646_p10, %p1640_p4 }
  0x84   : > { %1268 = vmatpush3.msra.mxu0 %v2023_v5  ;;  %1306 = vmatpush3.msra.mxu1 %v2023_v5 }
  0x85   : > { %1269 = vmatprep.subr.mxu0 %v2029_v6  ;;  %1307 = vmatprep.subr.mxu1 %v2029_v6 }
  0x86   : > { %1270 = vmatpush3.msra.mxu0 %v2029_v6  ;;  %1308 = vmatpush3.msra.mxu1 %v2029_v6 }
  0x87   : > { %1271 = vmatprep.subr.mxu0 %v2035_v7  ;;  %1309 = vmatprep.subr.mxu1 %v2035_v7 }
  0x88   : > { %1272 = vmatpush3.msra.mxu0 %v2035_v7  ;;  %1310 = vmatpush3.msra.mxu1 %v2035_v7 }
  0x89   : > { %1273 = vmatprep.subr.mxu0 %v2041_v8  ;;  %1311 = vmatprep.subr.mxu1 %v2041_v8 }
  0x8a   : > { %1274 = vmatpush3.msra.mxu0 %v2041_v8  ;;  %1312 = vmatpush3.msra.mxu1 %v2041_v8 }
  0x8b   : > { %1275 = vmatprep.subr.mxu0 %v2047_v9  ;;  %1313 = vmatprep.subr.mxu1 %v2047_v9 }
  0x8c   : > { %1276 = vmatpush3.msra.mxu0 %v2047_v9  ;;  %1314 = vmatpush3.msra.mxu1 %v2047_v9 }
  0x8d   : > { %1277 = vmatprep.subr.mxu0 %v2053_v10  ;;  %1315 = vmatprep.subr.mxu1 %v2053_v10 }
  0x8e   : > { %1278 = vmatpush3.msra.mxu0 %v2053_v10  ;;  %1316 = vmatpush3.msra.mxu1 %v2053_v10 }
  0x8f   : > { %1279 = vmatprep.subr.mxu0 %v2059_v11  ;;  %1317 = vmatprep.subr.mxu1 %v2059_v11 }
  0x90   : > { %1280 = vmatpush3.msra.mxu0 %v2059_v11  ;;  %1318 = vmatpush3.msra.mxu1 %v2059_v11 }
  0x91   : > { %1281 = vmatprep.subr.mxu0 %v2065_v12  ;;  %1319 = vmatprep.subr.mxu1 %v2065_v12 }
  0x92   : > { %1282 = vmatpush3.msra.mxu0 %v2065_v12  ;;  %1320 = vmatpush3.msra.mxu1 %v2065_v12 }
  0x93   : > { %1283 = vmatprep.subr.mxu0 %v2071_v13  ;;  %1321 = vmatprep.subr.mxu1 %v2071_v13 }
  0x94   : > { %1284 = vmatpush3.msra.mxu0 %v2071_v13  ;;  %1322 = vmatpush3.msra.mxu1 %v2071_v13 }
  0x95   : > { %1285 = vmatprep.subr.mxu0 %v2077_v14  ;;  %1323 = vmatprep.subr.mxu1 %v2077_v14 }
  0x96   : > { %1286 = vmatpush3.msra.mxu0 %v2077_v14  ;;  %1324 = vmatpush3.msra.mxu1 %v2077_v14 }
  0x97   : > { %1287 = vmatprep.subr.mxu0 %v2083_v15  ;;  %1325 = vmatprep.subr.mxu1 %v2083_v15 }
  0x98   : > { %1288 = vmatpush3.msra.mxu0 %v2083_v15  ;;  %1326 = vmatpush3.msra.mxu1 %v2083_v15 }
  0x99   : > { %1327 = vmatprep.mubr.f32.mxu1 %v652_v16  ;;  %1289 = vmatprep.mubr.f32.mxu0 %v556_v17 }
  0x9a   : > { %1328 = vmatmul.mubr.f32.vlgmr.msra.gmra.mxu1 %v653_v18  ;;  %1333 = vmatprep.subr.mxu0 %v1738_v20 }
  0x9b   : > { %1368 = vmatprep.subr.mxu1 %v1738_v20  ;;  %1290 = vmatmul.mubr.f32.vlgmr.msra.gmra.mxu0 %v557_v19 }
  0x9c   : > { %1334 = vmatpush3.msra.mxu0 %v1997_v0  ;;  %1369 = vmatpush3.msra.mxu1 %v1997_v0 }
  0x9d   : > { %1335 = vmatprep.subr.mxu0 %v1738_v20  ;;  %1370 = vmatprep.subr.mxu1 %v1738_v20 }
  0x9e   : > { %1330 = vmatprep.mubr.f32.mxu1 %v654_v21  ;;  %1336 = vmatpush3.msra.mxu0 %v1999_v1 }
  0x9f   : > { %1371 = vmatpush3.msra.mxu1 %v1999_v1  ;;  %1337 = vmatprep.subr.mxu0 %v1738_v20 }
  0xa0   : > { %1331 = vmatmul.mubr.f32.gmra.mxu1 %v655_v22  ;;  %1372 = vmatprep.subr.mxu1 %v1738_v20 }
  0xa1   : > { %1338 = vmatpush3.msra.mxu0 %v2005_v2  ;;  %1373 = vmatpush3.msra.mxu1 %v2005_v2 }
  0xa2   : > { %1339 = vmatprep.subr.mxu0 %v1738_v20  ;;  %1374 = vmatprep.subr.mxu1 %v1738_v20 }
  0xa3   : > { %1340 = vmatpush3.msra.mxu0 %v2011_v3  ;;  %1375 = vmatpush3.msra.mxu1 %v2011_v3 }
  0xa4   : > { %1341 = vmatprep.subr.mxu0 %v1738_v20  ;;  %1376 = vmatprep.subr.mxu1 %v1738_v20 }
  0xa5   : > { %1342 = vmatpush3.msra.mxu0 %v2017_v4  ;;  %1377 = vmatpush3.msra.mxu1 %v2017_v4 }
  0xa6   : > { %1343 = vmatprep.subr.mxu0 %v1738_v20  ;;  %1378 = vmatprep.subr.mxu1 %v1738_v20 }
  0xa7   : > { %1344 = vmatpush3.msra.mxu0 %v2023_v5  ;;  %1379 = vmatpush3.msra.mxu1 %v2023_v5 }
  0xa8   : > { %1345 = vmatprep.subr.mxu0 %v1738_v20  ;;  %1380 = vmatprep.subr.mxu1 %v1738_v20 }
  0xa9   : > { %1346 = vmatpush3.msra.mxu0 %v2029_v6  ;;  %1381 = vmatpush3.msra.mxu1 %v2029_v6 }
  0xaa   : > { %1347 = vmatprep.subr.mxu0 %v1738_v20  ;;  %1382 = vmatprep.subr.mxu1 %v1738_v20 }
  0xab   : > { %1348 = vmatpush3.msra.mxu0 %v2035_v7  ;;  %1383 = vmatpush3.msra.mxu1 %v2035_v7 }
  0xac   : > { %1349 = vmatprep.subr.mxu0 %v1738_v20  ;;  %1384 = vmatprep.subr.mxu1 %v1738_v20 }
  0xad   : > { %1350 = vmatpush3.msra.mxu0 %v2041_v8  ;;  %1385 = vmatpush3.msra.mxu1 %v2041_v8 }
  0xae   : > { %1351 = vmatprep.subr.mxu0 %v1738_v20  ;;  %1386 = vmatprep.subr.mxu1 %v1738_v20 }
  0xaf   : > { %1352 = vmatpush3.msra.mxu0 %v2047_v9  ;;  %1387 = vmatpush3.msra.mxu1 %v2047_v9 }
  0xb0   : > { %1353 = vmatprep.subr.mxu0 %v1738_v20  ;;  %1388 = vmatprep.subr.mxu1 %v1738_v20 }
  0xb1   : > { %1354 = vmatpush3.msra.mxu0 %v2053_v10  ;;  %1389 = vmatpush3.msra.mxu1 %v2053_v10 }
  0xb2   : > { %1355 = vmatprep.subr.mxu0 %v1738_v20  ;;  %1390 = vmatprep.subr.mxu1 %v1738_v20 }
  0xb3   : > { %1356 = vmatpush3.msra.mxu0 %v2059_v11  ;;  %1391 = vmatpush3.msra.mxu1 %v2059_v11 }
  0xb4   : > { %1357 = vmatprep.subr.mxu0 %v1738_v20  ;;  %1392 = vmatprep.subr.mxu1 %v1738_v20 }
  0xb5   : > { %1358 = vmatpush3.msra.mxu0 %v2065_v12  ;;  %1393 = vmatpush3.msra.mxu1 %v2065_v12 }
  0xb6   : > { %1359 = vmatprep.subr.mxu0 %v1738_v20  ;;  %1394 = vmatprep.subr.mxu1 %v1738_v20 }
  0xb7   : > { %1292 = vmatprep.mubr.f32.mxu0 %v558_v23  ;;  %1360 = vmatpush3.msra.mxu0 %v2071_v13 }
  0xb8   : > { %1395 = vmatpush3.msra.mxu1 %v2071_v13  ;;  %1293 = vmatmul.mubr.f32.gmra.mxu0 %v559_v24 }
  0xb9   : > { %1361 = vmatprep.subr.mxu0 %v1738_v20  ;;  %1396 = vmatprep.subr.mxu1 %v1738_v20 }
  0xba   : > { %1362 = vmatpush3.msra.mxu0 %v2077_v14  ;;  %1397 = vmatpush3.msra.mxu1 %v2077_v14 }
  0xbb   : > { %1363 = vmatprep.subr.mxu0 %v1738_v20  ;;  %1398 = vmatprep.subr.mxu1 %v1738_v20 }
  0xbc   : > { %1364 = vmatpush3.msra.mxu0 %v2083_v15  ;;  %1365 = vmatprep.mubr.msk.f32.mxu0 %vm1739_vm0, %v1738_v20 }
  0xbd   : > { %1399 = vmatpush3.msra.mxu1 %v2083_v15  ;;  %1400 = vmatprep.mubr.msk.f32.mxu1 %vm1739_vm0, %v1738_v20 }
  0xbe   : > { %1366 = vmatmul.mubr.f32.vlgmr.msra.gmra.mxu0 %v741_v25  ;;  %1401 = vmatmul.mubr.f32.vlgmr.msra.gmra.mxu1 %v812_v26 }
 0x15a   : > { %v2169_v27 = vpop.f32.mrf.mxu1 }
 0x15b   : > { %893 = vrot.lane.b32.xlu1 %v2169_v27, %s1740_s27  ;;  %885 = vrot.lane.b32.xlu0 %v2169_v27, %s1741_s7  ;;  %v1291_v33 = vpop.f32.mrf.mxu0  ;;  %v908_v43 = vrot.slane %v2169_v27, 7  ;;  %v921_v44 = vrot.slane %v2169_v27, 1 }
 0x15c   : > { %v722_v28 = vpop.f32.mrf.mxu1  ;;  %v639_v54 = vadd.f32 %v1291_v33, %v1170_v49 }
 0x15d   : > { %v633_v34 = vpop.f32.mrf.mxu0  ;;  %v934_v48 = vmax.f32 %v908_v43, %v921_v44  ;;  %v907_v52 = vrot.slane %v722_v28, 7  ;;  %v920_v53 = vrot.slane %v722_v28, 1 }
 0x15e   : > { %v634_v5 = vadd.f32 %v1170_v49, %v633_v34 }
 0x15f   : > { %883 = vrot.lane.b32.xlu0 %v722_v28, %s1741_s7  ;;  %v933_v59 = vmax.f32 %v907_v52, %v920_v53 }
 0x160   : > { %v1332_v29 = vpop.f32.mrf.mxu1 }
 0x161   : > { %889 = vrot.lane.b32.xlu1 %v1332_v29, %s1741_s7  ;;  %v943_v30 = vmax.f32 %v2169_v27, %v1332_v29  ;;  %v910_v2 = vrot.slane %v1332_v29, 7  ;;  %v923_v3 = vrot.slane %v1332_v29, 1 }
 0x162   : > { %v732_v31 = vpop.f32.mrf.mxu1 }
 0x163   : > { %891 = vrot.lane.b32.xlu0 %v722_v28, %s1740_s27  ;;  %v942_v32 = vmax.f32 %v722_v28, %v732_v31  ;;  %v909_v62 = vrot.slane %v732_v31, 7  ;;  %v922_v63 = vrot.slane %v732_v31, 1  ;;  %v936_v12 = vmax.f32 %v910_v2, %v923_v3 }
 0x165   : > { %887 = vrot.lane.b32.xlu1 %v732_v31, %s1741_s7  ;;  %v935_v8 = vmax.f32 %v909_v62, %v922_v63 }
 0x167   : > { %895 = vrot.lane.b32.xlu0 %v732_v31, %s1740_s27 }
 0x169   : > { %897 = vrot.lane.b32.xlu1 %v1332_v29, %s1740_s27 }
 0x178   : > { %v1294_v35 = vpop.f32.mrf.mxu0 }
 0x179   : > { %v649_v18 = vadd.f32 %v1294_v35, %v1170_v49 }
 0x17a   : > { %v643_v36 = vpop.f32.mrf.mxu0 }
 0x17b   : > { %v644_v14 = vadd.f32 %v1170_v49, %v643_v36 }
 0x17e   : > { %v808_v37 = vpop.f32.mrf.mxu0  ;;  %v879_v38 = vpop.f32.mrf.mxu1 }
 0x17f   : > { %v941_v39 = vmax.f32 %v808_v37, %v2169_v27  ;;  %v944_v40 = vmax.f32 %v732_v31, %v879_v38 }
 0x180   : > { %v1367_v41 = vpop.f32.mrf.mxu0  ;;  %v1402_v42 = vpop.f32.mrf.mxu1 }
 0x1cd   : > { %v894_v45 = vpop.permute.xlu1 %893  ;;  %v886_v46 = vpop.permute.xlu0 %885 }
 0x1ce   : > { %v900_v47 = vmax.f32 %v886_v46, %v894_v45 }
 0x1d0   : > { %v938_v50 = vmax.f32 %v900_v47, %v934_v48 }
 0x1d1   : > { %v884_v51 = vpop.permute.xlu0 %883 }
 0x1d2   : > { %v946_v55 = vmax.f32 %v938_v50, %v942_v32 }
 0x1d3   : > { %v890_v56 = vpop.permute.xlu1 %889 }
 0x1d4   : > { %v950_v57 = vadd.f32 %v946_v55, %v639_v54 }
 0x1d5   : > { %v892_v58 = vpop.permute.xlu0 %891 }
 0x1d6   : > { %v954_v60 = vmax.f32 %v950_v57, 0.0  ;;  %v899_v61 = vmax.f32 %v884_v51, %v892_v58 }
 0x1d7   : > { %v888_v0 = vpop.permute.xlu1 %887 }
 0x1d8   : > { %958 = vst [vmem:[%s2181_s12 + $0x8] sm:$0xff] %v954_v60  ;;  %v937_v1 = vmax.f32 %v899_v61, %v933_v59 }
 0x1d9   : > { %v896_v4 = vpop.permute.xlu0 %895 }
 0x1da   : > { %v945_v6 = vmax.f32 %v937_v1, %v941_v39  ;;  %v901_v7 = vmax.f32 %v888_v0, %v896_v4 }
 0x1db   : > { %v898_v9 = vpop.permute.xlu1 %897 }
 0x1dc   : > { %v949_v10 = vadd.f32 %v945_v6, %v634_v5  ;;  %v939_v11 = vmax.f32 %v901_v7, %v935_v8  ;;  %v902_v13 = vmax.f32 %v890_v56, %v898_v9 }
 0x1de   : > { %v953_v15 = vmax.f32 %v949_v10, 0.0  ;;  %v947_v16 = vmax.f32 %v939_v11, %v943_v30  ;;  %v940_v17 = vmax.f32 %v902_v13, %v936_v12 }
 0x1e0   : > { %957 = vst [vmem:[%s2181_s12] sm:$0xff] %v953_v15  ;;  %v951_v19 = vadd.f32 %v947_v16, %v644_v14  ;;  %v948_v20 = vmax.f32 %v940_v17, %v944_v40 }
 0x1e2   : > { %v955_v21 = vmax.f32 %v951_v19, 0.0  ;;  %v952_v22 = vadd.f32 %v948_v20, %v649_v18 }
 0x1e4   : > { %959 = vst [vmem:[%s2181_s12 + $0x10] sm:$0xff] %v955_v21  ;;  %v956_v23 = vmax.f32 %v952_v22, 0.0 }
 0x1e6   : > { %960 = vst [vmem:[%s2181_s12 + $0x18] sm:$0xff] %v956_v23 }
 0x1e7   : > { %1650 = shalt.err (!%p1647_p11)
}
 0x1e8   : > { %s1651_s9 = scalar_lea.hbm %s2192_s20, 512  ;;  %s1655_s23 = scalar_lea.hbm %s2248_s6, 1024 }
 0x1e9   : > { %p1652_p13 = scmp.ne.s32.totalorder %s2192_s20, %s1651_s9  ;;  %p1656_p1 = scmp.lt.s32.totalorder %s2192_s20, %s2248_s6 }
 0x1ea   : > { %p1657_p12 = scmp.lt.s32.totalorder %s1655_s23, %s1651_s9 }
 0x1eb   : > { %p1653_p3 = pnand %p1652_p13, %p1832_p8 }
 0x1ec   : > { %p1658_p9 = por %p1657_p12, %p1656_p1 }
 0x1ed   : > { %p1654_p0 = pneg %p1653_p3 }
 0x1ef   : > { %p1659_p7 = pnand %p1658_p9, %p1654_p0 }
 0x1f1   : > { %1662 = shalt.err (!%p1659_p7)
}
 0x1f2   : > { %s1743_s14 = smov 128   ;;  %s1744_s16 = smov 8  }
 0x1f3   : > { %1415 = dma.vmem_to_hbm [thread:$0]  (%p1832_p8), %s2187_s18, 512, %s2192_s20, %s962_s21, %s1743_s14, %s1743_s14, %s1744_s16  }
 0x1f4 PF: > { %s2287_s27 = sld [smem:[#allocation17_spill]]  ;;  %p2290_p4 = scmp.ge.s32.totalorder %s1729_s26, 2 }
 0x1f5   : > { %s2288_s7 = sld [smem:[#allocation20_spill]] }
 0x1fa   : > { %s992_s4 = sand.u32 1, %s2287_s27  }
 0x1fb   : > { %p2289_p5 = scmp.ne.s32.totalorder %s2288_s7, 0  ;;  %s993_s28 = scalar_lea.sflag [#allocation4], %s992_s4 }
 0x1fd   : > { %p1435_p2 = pnand %p2290_p4, %p2289_p5 }
 0x1ff   : > { %p1436_p6 = pneg %p1435_p2 }
 0x201   : > { %1704 = dma.done.wait (%p1436_p6), %s993_s28, 512  }
 0x202   : > { %1706 = vsyncadd (%p1436_p6), %s993_s28, 4294966784  ;;  %s28_s26 = sadd.s32 1, %s1729_s26   ;;  %s2291_s12 = sld [smem:[#allocation18_spill]] }
 0x203   : > { %p25_p10 = scmp.ge.s32.totalorder %s28_s26, 4   ;;  %s2292_s23 = sld [smem:[#allocation22_spill]] }
 0x204   : > { %s2293_s24 = sld [smem:[#allocation19_spill]]  ;;  %s2295_s21 = smov %s1713_s22 }
 0x205   : > { %s2294_s25 = sld [smem:[#allocation21_spill]]  ;;  %27 = sbr.rel (!%p25_p10) target bundleno = 14 (0xe), region = 130 }
 0x208   : > { %s2296_s22 = smov %s2291_s12 }
 0x20a   :  { %998 = vsyncpa [#allocation3], 1 }
 0x20b   :  { %1000 = vsyncpa [#allocation3 + $0x1], 1 }
 0x20c   :  { %1001 = vsyncpa [#allocation6], 1 }
 0x20d   :  { %1003 = vsyncpa [#allocation6 + $0x1], 1 }
 0x20e   :  { %1004 = vsyncpa [#allocation9], 1 }
 0x20f   :  { %1006 = vsyncpa [#allocation9 + $0x1], 1 }
 0x210   :  { %1007 = vsyncpa [#allocation4], 1 }
 0x211   :  { %1009 = vsyncpa [#allocation4 + $0x1], 1 }

</bundles_post_ra>
